<compile_context>
chip_gen: v7x
topology: tpu7x:2x2x1
jax: 0.10.0
libtpu: 0.0.40
codegen_flags: <defaults>
</compile_context>

<pallas_src>
import jax
import jax.numpy as jnp
from jax.experimental import pallas as pl
from jax.experimental.pallas import tpu as pltpu

_LANES = 128


def _sublane_multiple(dtype) -> int:
    """Required second-to-last-dim multiple: 8 (32-bit), 16 (16-bit), 32 (8-bit)."""
    bits = jnp.dtype(dtype).itemsize * 8
    return max(8, 256 // bits)


def _round_up(x: int, m: int) -> int:
    return -(-x // m) * m


def _abs_tanh_kernel(x_ref, o_ref):
    # tanh -> EUP, abs -> VPU; both co-issue with the streaming DMAs, so the
    # kernel stays purely HBM-bandwidth bound.  Upcast narrow floats so the
    # EUP path is native f32 on v5e (no bf16 EUP there).
    x = x_ref[...]
    if x.dtype != jnp.float32:
        x = x.astype(jnp.float32)
    o_ref[...] = jnp.abs(jnp.tanh(x)).astype(o_ref.dtype)


def abs_tanh(x: jax.Array, *, tile_rows: int = 4096,
             min_pallas_elems: int = 65536) -> jax.Array:
    """Computes abs(tanh(x)) elementwise with a Pallas TPU kernel."""
    orig_shape = x.shape
    orig_dtype = x.dtype
    n = x.size

    if n == 0:
        return x
    # Tiny inputs: pallas_call launch/pipeline overhead dominates -> plain XLA.
    if n < min_pallas_elems:
        return jnp.abs(jnp.tanh(x.astype(jnp.float32))).astype(orig_dtype)

    sub = _sublane_multiple(orig_dtype)

    # Lane-dense (rows, 128) slab.  Skip pad/slice when already a multiple of
    # 128 (typical for NN activations); otherwise pad minimally to 128.
    if n % _LANES == 0:
        rows = n // _LANES
        x2d = x.reshape(rows, _LANES)
        padded_n = None
    else:
        rows = pl.cdiv(n, _LANES)
        padded_n = rows * _LANES
        x2d = jnp.pad(jnp.ravel(x), (0, padded_n - n)).reshape(rows, _LANES)

    # Fixed, large, sublane-aligned tile; cdiv grid lets Pallas mask the
    # partial last block instead of shrinking the tile.
    tr = max(sub, min(_round_up(tile_rows, sub), _round_up(rows, sub)))
    grid = (pl.cdiv(rows, tr),)

    out2d = pl.pallas_call(
        _abs_tanh_kernel,
        out_shape=jax.ShapeDtypeStruct((rows, _LANES), orig_dtype),
        grid_spec=pltpu.PrefetchScalarGridSpec(
            num_scalar_prefetch=0,
            grid=grid,
            in_specs=[pl.BlockSpec((tr, _LANES), lambda i: (i, 0))],
            out_specs=pl.BlockSpec((tr, _LANES), lambda i: (i, 0)),
        ),
        compiler_params=pltpu.CompilerParams(
            # Row axis is independent -> shard across TensorCores (v7x megacore).
            dimension_semantics=("parallel",),
        ),
    )(x2d)

    if padded_n is None:
        return out2d.reshape(orig_shape)
    return out2d.reshape(padded_n)[:n].reshape(orig_shape)


if __name__ == "__main__":
    k0, k1 = jax.random.split(jax.random.PRNGKey(0))

    # Small shape consistent with a conv-style NCHW feature map.
    x = jax.random.normal(k0, (2, 4, 16, 16), dtype=jnp.float32)
    ref = jnp.abs(jnp.tanh(x))

    # Force the Pallas path even at this small demo size so the kernel is
    # actually compiled and executed on TPU.
    out = jax.block_until_ready(abs_tanh(x, min_pallas_elems=0))
    assert out.shape == x.shape and out.dtype == x.dtype
    assert jnp.allclose(out, ref, atol=1e-6, rtol=1e-6)

    # Exercise the padded (numel % 128 != 0) + partial-block path.
    y = jax.random.normal(k1, (3, 5, 7, 11), dtype=jnp.float32)  # 1155 elems
    out_y = jax.block_until_ready(abs_tanh(y, min_pallas_elems=0))
    assert jnp.allclose(out_y, jnp.abs(jnp.tanh(y)), atol=1e-6, rtol=1e-6)

    # Default small-input fast path (no pallas_call) matches as well.
    out_fast = jax.block_until_ready(abs_tanh(x))
    assert jnp.allclose(out_fast, ref, atol=1e-6, rtol=1e-6)

    print("KERNEL_OK")
</pallas_src>

<mosaic_0001>
module attributes {stable_mosaic.version = 11 : i64} {
  func.func @_abs_tanh_kernel(%arg0: i32, %arg1: memref<16x128xf32, #tpu.memory_space<vmem>>, %arg2: memref<16x128xf32, #tpu.memory_space<vmem>>) attributes {dimension_semantics = [#tpu.dimension_semantics<parallel>], iteration_bounds = array<i64: 1>, scalar_prefetch = 0 : i64, scratch_operands = 0 : i64, tpu.core_type = #tpu.core_type<tc>, window_params = [{transform_indices = @transform_0, window_bounds = array<i64: 16, 128>}, {transform_indices = @transform_1, window_bounds = array<i64: 16, 128>}]} {
    %c0 = arith.constant 0 : index
    %c0_0 = arith.constant 0 : index
    %0 = vector.load %arg1[%c0, %c0_0] : memref<16x128xf32, #tpu.memory_space<vmem>>, vector<16x128xf32>
    %1 = math.tanh %0 : vector<16x128xf32>
    %2 = math.absf %1 : vector<16x128xf32>
    %c0_1 = arith.constant 0 : index
    %c0_2 = arith.constant 0 : index
    %3 = vector.load %arg2[%c0_1, %c0_2] : memref<16x128xf32, #tpu.memory_space<vmem>>, vector<16x128xf32>
    tpu.vector_store %arg2[%c0_1, %c0_2], %2 {strides = array<i32>} : memref<16x128xf32, #tpu.memory_space<vmem>>, vector<16x128xf32>,
    return
  }
  func.func @transform_0(%arg0: i32) -> (i32, i32) {
    %c0_i32 = arith.constant 0 : i32
    %c0_i32_0 = arith.constant 0 : i32
    return %arg0, %c0_i32 : i32, i32
  }
  func.func @transform_1(%arg0: i32) -> (i32, i32) {
    %c0_i32 = arith.constant 0 : i32
    %c0_i32_0 = arith.constant 0 : i32
    return %arg0, %c0_i32 : i32, i32
  }
}

</mosaic_0001>

<bundles_post_ra>
// kernel: tpu_custom_call.1
= control target key start
LH: loop header
LB: loop body
LE: loop exit
PB: predicated region body
PF: predicated region fallthrough
CT: control target
= control target key end

     0   :  { %6 = vsyncpa [#allocation3], 0  ;;  %s148_s0 = inlined_call_operand.hbm [shape: f32[16,128], index: 0, kind: input, shape index: {}]   ;;  %s149_s1 = inlined_call_operand.hbm [shape: f32[16,128], index: 1, kind: output, shape index: {}]  }
   0x1   :  { %7 = vsyncpa [#allocation4], 0  ;;  %s104_s6 = smov [#allocation2]   ;;  %s56_s10 = scalar_lea.hbm %s148_s0, 256 }
   0x2   :  { %s13_s7 = sshll.u32 %s104_s6, 4  ;;  %p57_p0 = scmp.ne.s32.totalorder %s148_s0, %s56_s10  ;;  %s14_s7 = int_to_ptr.vmem [resolvable:$true] %s13_s7 }
   0x3   :  { %p60_p1 = scmp.lt.u32.totalorder %s56_s10, %s148_s0 }
   0x5   :  { %p62_p2 = pnand %p60_p1, %p57_p0 }
   0x7   :  { %65 = shalt.err (!%p62_p2)
}
   0x8   :  { %s66_s15 = scalar_lea.vmem %s14_s7, 256  ;;  %p71_p4 = scmp.lt.s32.totalorder %s14_s7, %s14_s7 }
   0x9   :  { %p67_p3 = scmp.ne.s32.totalorder %s14_s7, %s66_s15  ;;  %p72_p5 = scmp.lt.s32.totalorder %s66_s15, %s66_s15 }
   0xb   :  { %p73_p6 = por %p72_p5, %p71_p4 }
   0xd   :  { %p74_p7 = pnand %p73_p6, %p67_p3 }
   0xf   :  { %77 = shalt.err (!%p74_p7)
}
  0x10   :  { %s105_s16 = smov 128   ;;  %s106_s17 = smov 8  }
  0x11   :  { %19 = dma.hbm_to_vmem [thread:$0]  %s148_s0, 256, %s14_s7, [#allocation3], %s105_s16, %s105_s16, %s106_s17  }
  0x12   :  { %100 = dma.done.wait [#allocation3], 256  }
  0x13   :  { %101 = vsyncadd [#allocation3], 4294967040  ;;  %v23_v0 = vld [vmem:[#allocation2] sm:$0xff]  ;;  %v24_v1 = vld [vmem:[#allocation2 + $0x8] sm:$0xff]  ;;  %s107_s20 = smov [#allocation5]  }
  0x14   :  { %52 = vtanh.f32 %v23_v0  ;;  %s36_s21 = sshll.u32 %s107_s20, 4  ;;  %s37_s21 = int_to_ptr.vmem [resolvable:$true] %s36_s21 }
  0x15   :  { %54 = vtanh.f32 %v24_v1  ;;  %s78_s22 = scalar_lea.vmem %s37_s21, 256  ;;  %p83_p9 = scmp.lt.s32.totalorder %s37_s21, %s37_s21 }
  0x16   :  { %p79_p8 = scmp.ne.s32.totalorder %s37_s21, %s78_s22  ;;  %p84_p10 = scmp.lt.s32.totalorder %s78_s22, %s78_s22 }
  0x18   :  { %p85_p11 = por %p84_p10, %p83_p9 }
  0x1a   :  { %p86_p12 = pnand %p85_p11, %p79_p8 }
  0x1e   :  { %v53_v2 = vpop.eup %52 }
  0x1f   :  { %v55_v3 = vpop.eup %54  ;;  %v27_v4 = vand.u32 2147483647, %v53_v2 }
  0x20   :  { %v28_v5 = vand.u32 2147483647, %v55_v3 }
  0x21   :  { %29 = vst [vmem:[#allocation5] sm:$0xff] %v27_v4 }
  0x22   :  { %30 = vst [vmem:[#allocation5 + $0x8] sm:$0xff] %v28_v5 }
  0x23   :  { %89 = shalt.err (!%p86_p12)
}
  0x24   :  { %s90_s24 = scalar_lea.hbm %s149_s1, 256 }
  0x25   :  { %p91_p13 = scmp.ne.s32.totalorder %s149_s1, %s90_s24  ;;  %p94_p0 = scmp.lt.u32.totalorder %s90_s24, %s149_s1 }
  0x27   :  { %p96_p1 = pnand %p94_p0, %p91_p13 }
  0x29   :  { %99 = shalt.err (!%p96_p1)
}
  0x2a   :  { %42 = dma.vmem_to_hbm [thread:$0]  %s37_s21, 256, %s149_s1, [#allocation4], %s105_s16, %s105_s16, %s106_s17  }
  0x2b   :  { %102 = dma.done.wait [#allocation4], 256  }
  0x2c   :  { %103 = vsyncadd [#allocation4], 4294967040 }
  0x2d   :  { %46 = vsyncpa [#allocation3], 1 }
  0x2e   :  { %47 = vsyncpa [#allocation4], 1 }

</bundles_post_ra>
